<compile_context>
chip_gen: v7x
topology: tpu7x:2x2x1
jax: 0.10.0
libtpu: 0.0.40
codegen_flags: <defaults>
</compile_context>

<pallas_src>
import jax
import jax.numpy as jnp
from jax.experimental import pallas as pl
from jax.experimental.pallas import tpu as pltpu


def _round_up(n, m):
    return ((n + m - 1) // m) * m


def graphsage_agg_kernel(adj_ref, h_ref, out_ref, deg_ref):
    """One (row-tile i, contraction-tile k) step of out = norm(adj @ h)."""
    k = pl.program_id(1)

    @pl.when(k == 0)
    def _():
        out_ref[...] = jnp.zeros_like(out_ref)
        deg_ref[...] = jnp.zeros_like(deg_ref)

    adj_tile = adj_ref[...]                                   # (tm, tk) bf16 {0,1}

    # bf16 x bf16 MXU matmul, f32 accumulation into the VMEM-resident out tile.
    out_ref[...] += jnp.dot(adj_tile, h_ref[...],
                            preferred_element_type=jnp.float32)

    # Degree partial sum, f32-accumulated (XLU reduce, off the MXU/DMA path).
    deg_ref[...] += jnp.sum(adj_tile, axis=1, keepdims=True, dtype=jnp.float32)

    @pl.when(k == pl.num_programs(1) - 1)
    def _():
        inv = 1.0 / (deg_ref[...] + 1e-6)                     # exact; once per tile
        out_ref[...] = jnp.maximum(out_ref[...] * inv, 0.0)


def graphsage_forward(x, adj, w, b, *, tm_target=512, tk_target=2048):
    """x: [N, F_in], adj: [N, N] dense {0,1} (ideally bf16), w: [F_in, F_out], b: [F_out]."""
    N, _ = x.shape
    f_out = w.shape[1]

    n128 = _round_up(N, 128)
    f_out_pad = _round_up(f_out, 128)

    # Tile sizes: multiples of 128, as large as useful, never collapsed to 128
    # for awkward N (we round N up to the tile size instead; padding is zeros).
    tm = min(tm_target, n128)
    tk = min(tk_target, n128)
    # v7x has 2 TensorCores: keep at least 2 row tiles on the "parallel" axis
    # whenever the problem is big enough to split.
    if n128 >= 256:
        tm = min(tm, _round_up(n128 // 2, 128))

    rows_pad = _round_up(N, tm)
    cols_pad = _round_up(N, tk)
    grid = (rows_pad // tm, cols_pad // tk)

    # ---- h = x @ W + b hoisted out of the kernel: one plain XLA GEMM. ----
    h = x.astype(jnp.float32) @ w.astype(jnp.float32) + b.reshape(1, -1).astype(jnp.float32)
    h_p = jnp.pad(h.astype(jnp.bfloat16),
                  ((0, cols_pad - N), (0, f_out_pad - f_out)))

    # Adjacency stays bf16 ({0,1} exact); only cast / pad when unavoidable.
    adj_b = adj if adj.dtype == jnp.bfloat16 else adj.astype(jnp.bfloat16)
    if adj_b.shape != (rows_pad, cols_pad):
        adj_b = jnp.pad(adj_b, ((0, rows_pad - adj_b.shape[0]),
                                (0, cols_pad - adj_b.shape[1])))

    # Explicit VMEM budget: double-buffered inputs + resident output tile.
    vmem_bytes = (2 * tm * tk * 2             # adj tiles (bf16)
                  + 2 * tk * f_out_pad * 2    # h blocks  (bf16)
                  + 2 * tm * f_out_pad * 4    # out tile  (f32)
                  + tm * 4)                   # degree scratch
    vmem_limit = min(max(2 * vmem_bytes, 16 * 1024 * 1024), 48 * 1024 * 1024)

    out = pl.pallas_call(
        graphsage_agg_kernel,
        out_shape=jax.ShapeDtypeStruct((rows_pad, f_out_pad), jnp.float32),
        grid_spec=pltpu.PrefetchScalarGridSpec(
            num_scalar_prefetch=0,
            grid=grid,
            in_specs=[
                pl.BlockSpec((tm, tk), lambda i, k: (i, k)),           # adj tile
                pl.BlockSpec((tk, f_out_pad), lambda i, k: (k, 0)),    # h block
            ],
            out_specs=pl.BlockSpec((tm, f_out_pad), lambda i, k: (i, 0)),
            scratch_shapes=[
                pltpu.VMEM((tm, 1), jnp.float32),                      # degree partial sum
            ],
        ),
        compiler_params=pltpu.CompilerParams(
            dimension_semantics=("parallel", "arbitrary"),
            vmem_limit_bytes=vmem_limit,
        ),
    )(adj_b, h_p)

    return out[:N, :f_out]


def graphsage_reference(x, adj, w, b):
    h = x @ w + b.reshape(1, -1)
    agg = adj @ h
    deg = adj.sum(axis=1, keepdims=True)
    return jnp.maximum(agg / (deg + 1e-6), 0.0)


if __name__ == "__main__":
    key = jax.random.PRNGKey(0)
    k_x, k_adj, k_w, k_b = jax.random.split(key, 4)

    N = 16          # number of graph nodes
    in_features = 8
    out_features = 32

    # Deterministic inputs / parameters (no checkpoint load).
    x = jax.random.normal(k_x, (N, in_features), dtype=jnp.float32)
    # Random binary adjacency with self loops (rows always have degree >= 1).
    adj = (jax.random.uniform(k_adj, (N, N)) < 0.3).astype(jnp.float32)
    adj = jnp.maximum(adj, jnp.eye(N, dtype=jnp.float32))
    # Kept upstream in bf16 ({0,1} exact) so the kernel wrapper never pays an
    # N^2 f32->bf16 cast per call.  NOTE: assumes a {0,1} adjacency; a weighted
    # adjacency would lose precision in bf16.
    adj_bf16 = adj.astype(jnp.bfloat16)

    # nn.Linear(in_features, out_features): weight [out, in], bias [out].
    # Stored transposed as [in, out] for the wrapper-side GEMM.
    bound = 1.0 / (in_features ** 0.5)
    w = jax.random.uniform(k_w, (in_features, out_features),
                           minval=-bound, maxval=bound, dtype=jnp.float32)
    b = jax.random.uniform(k_b, (out_features,),
                           minval=-bound, maxval=bound, dtype=jnp.float32)

    out = graphsage_forward(x, adj_bf16, w, b)
    jax.block_until_ready(out)

    ref = graphsage_reference(x, adj, w, b)
    assert out.shape == (N, out_features)
    # Tolerance accounts for h being fed to the aggregation MXU in bf16.
    assert jnp.allclose(out, ref, atol=2e-2, rtol=2e-2), "mismatch vs reference"

    print("KERNEL_OK")
</pallas_src>

<mosaic_0001>
module attributes {stable_mosaic.version = 11 : i64} {
  func.func @graphsage_agg_kernel(%arg0: i32, %arg1: i32, %arg2: memref<128x128xbf16, #tpu.memory_space<vmem>>, %arg3: memref<128x128xbf16, #tpu.memory_space<vmem>>, %arg4: memref<128x128xf32, #tpu.memory_space<vmem>>, %arg5: memref<128x1xf32, #tpu.memory_space<vmem>>) attributes {dimension_semantics = [#tpu.dimension_semantics<parallel>, #tpu.dimension_semantics<arbitrary>], iteration_bounds = array<i64: 1, 1>, scalar_prefetch = 0 : i64, scratch_operands = 1 : i64, tpu.core_type = #tpu.core_type<tc>, window_params = [{transform_indices = @transform_0, window_bounds = array<i64: 128, 128>}, {transform_indices = @transform_1, window_bounds = array<i64: 128, 128>}, {transform_indices = @transform_2, window_bounds = array<i64: 128, 128>}]} {
    %c0_i32 = arith.constant 0 : i32
    %0 = arith.cmpi eq, %arg1, %c0_i32 : i32
    %1 = arith.extui %0 : i1 to i32
    %c0_i32_0 = arith.constant 0 : i32
    %2 = arith.cmpi ne, %1, %c0_i32_0 : i32
    scf.if %2 {
      %cst_15 = arith.constant 0.000000e+00 : f32
      %18 = vector.broadcast %cst_15 : f32 to vector<128x128xf32>
      %c0_16 = arith.constant 0 : index
      %c0_17 = arith.constant 0 : index
      %19 = vector.load %arg4[%c0_16, %c0_17] : memref<128x128xf32, #tpu.memory_space<vmem>>, vector<128x128xf32>
      tpu.vector_store %arg4[%c0_16, %c0_17], %18 {strides = array<i32>} : memref<128x128xf32, #tpu.memory_space<vmem>>, vector<128x128xf32>,
      %cst_18 = arith.constant 0.000000e+00 : f32
      %20 = vector.broadcast %cst_18 : f32 to vector<128x1xf32>
      %c0_19 = arith.constant 0 : index
      %c0_20 = arith.constant 0 : index
      %21 = vector.load %arg5[%c0_19, %c0_20] : memref<128x1xf32, #tpu.memory_space<vmem>>, vector<128x1xf32>
      tpu.vector_store %arg5[%c0_19, %c0_20], %20 {strides = array<i32>} : memref<128x1xf32, #tpu.memory_space<vmem>>, vector<128x1xf32>,
    } else {
    }
    %c0 = arith.constant 0 : index
    %c0_1 = arith.constant 0 : index
    %3 = vector.load %arg2[%c0, %c0_1] : memref<128x128xbf16, #tpu.memory_space<vmem>>, vector<128x128xbf16>
    %c0_2 = arith.constant 0 : index
    %c0_3 = arith.constant 0 : index
    %4 = vector.load %arg4[%c0_2, %c0_3] : memref<128x128xf32, #tpu.memory_space<vmem>>, vector<128x128xf32>
    %c0_4 = arith.constant 0 : index
    %c0_5 = arith.constant 0 : index
    %5 = vector.load %arg3[%c0_4, %c0_5] : memref<128x128xbf16, #tpu.memory_space<vmem>>, vector<128x128xbf16>
    %cst = arith.constant dense<0.000000e+00> : vector<128x128xf32>
    %6 = tpu.matmul %3, %5, %cst {dimension_numbers = #tpu.dot_dimension_numbers<[1], [0], [0], [1], [0, 0, 1, 1], [], []>} : vector<128x128xbf16>, vector<128x128xbf16>, vector<128x128xf32> -> vector<128x128xf32>
    %7 = arith.addf %4, %6 : vector<128x128xf32>
    %c0_6 = arith.constant 0 : index
    %c0_7 = arith.constant 0 : index
    %8 = vector.load %arg4[%c0_6, %c0_7] : memref<128x128xf32, #tpu.memory_space<vmem>>, vector<128x128xf32>
    tpu.vector_store %arg4[%c0_6, %c0_7], %7 {strides = array<i32>} : memref<128x128xf32, #tpu.memory_space<vmem>>, vector<128x128xf32>,
    %c0_8 = arith.constant 0 : index
    %c0_9 = arith.constant 0 : index
    %9 = vector.load %arg5[%c0_8, %c0_9] : memref<128x1xf32, #tpu.memory_space<vmem>>, vector<128x1xf32>
    %10 = arith.extf %3 : vector<128x128xbf16> to vector<128x128xf32>
    %cst_10 = arith.constant dense<0.000000e+00> : vector<128xf32>
    %11 = vector.multi_reduction <add>, %10, %cst_10 [1] : vector<128x128xf32> to vector<128xf32>
    %12 = vector.shape_cast %11 : vector<128xf32> to vector<128x1xf32>
    %13 = arith.addf %9, %12 : vector<128x1xf32>
    %c0_11 = arith.constant 0 : index
    %c0_12 = arith.constant 0 : index
    %14 = vector.load %arg5[%c0_11, %c0_12] : memref<128x1xf32, #tpu.memory_space<vmem>>, vector<128x1xf32>
    tpu.vector_store %arg5[%c0_11, %c0_12], %13 {strides = array<i32>} : memref<128x1xf32, #tpu.memory_space<vmem>>, vector<128x1xf32>,
    %c0_i32_13 = arith.constant 0 : i32
    %15 = arith.cmpi eq, %arg1, %c0_i32_13 : i32
    %16 = arith.extui %15 : i1 to i32
    %c0_i32_14 = arith.constant 0 : i32
    %17 = arith.cmpi ne, %16, %c0_i32_14 : i32
    scf.if %17 {
      %c0_15 = arith.constant 0 : index
      %c0_16 = arith.constant 0 : index
      %18 = vector.load %arg5[%c0_15, %c0_16] : memref<128x1xf32, #tpu.memory_space<vmem>>, vector<128x1xf32>
      %cst_17 = arith.constant 9.99999997E-7 : f32
      %19 = vector.broadcast %cst_17 : f32 to vector<128x1xf32>
      %20 = arith.addf %18, %19 : vector<128x1xf32>
      %cst_18 = arith.constant 1.000000e+00 : f32
      %21 = vector.broadcast %cst_18 : f32 to vector<128x1xf32>
      %22 = arith.divf %21, %20 : vector<128x1xf32>
      %c0_19 = arith.constant 0 : index
      %c0_20 = arith.constant 0 : index
      %23 = vector.load %arg4[%c0_19, %c0_20] : memref<128x128xf32, #tpu.memory_space<vmem>>, vector<128x128xf32>
      %24 = vector.broadcast %22 : vector<128x1xf32> to vector<128x128xf32>
      %25 = arith.mulf %23, %24 : vector<128x128xf32>
      %cst_21 = arith.constant 0.000000e+00 : f32
      %26 = vector.broadcast %cst_21 : f32 to vector<128x128xf32>
      %27 = arith.maximumf %25, %26 : vector<128x128xf32>
      %c0_22 = arith.constant 0 : index
      %c0_23 = arith.constant 0 : index
      %28 = vector.load %arg4[%c0_22, %c0_23] : memref<128x128xf32, #tpu.memory_space<vmem>>, vector<128x128xf32>
      tpu.vector_store %arg4[%c0_22, %c0_23], %27 {strides = array<i32>} : memref<128x128xf32, #tpu.memory_space<vmem>>, vector<128x128xf32>,
    } else {
    }
    return
  }
  func.func @transform_0(%arg0: i32, %arg1: i32) -> (i32, i32) {
    %c0_i32 = arith.constant 0 : i32
    return %arg0, %arg1 : i32, i32
  }
  func.func @transform_1(%arg0: i32, %arg1: i32) -> (i32, i32) {
    %c0_i32 = arith.constant 0 : i32
    %c0_i32_0 = arith.constant 0 : i32
    return %arg1, %c0_i32 : i32, i32
  }
  func.func @transform_2(%arg0: i32, %arg1: i32) -> (i32, i32) {
    %c0_i32 = arith.constant 0 : i32
    %c0_i32_0 = arith.constant 0 : i32
    return %arg0, %c0_i32 : i32, i32
  }
}

</mosaic_0001>

<bundles_post_ra>
// kernel: tpu_custom_call.1
= control target key start
LH: loop header
LB: loop body
LE: loop exit
PB: predicated region body
PF: predicated region fallthrough
CT: control target
= control target key end

     0   :  { %7 = vsyncpa [#allocation4], 0  ;;  %s1009_s0 = inlined_call_operand.hbm [shape: bf16[128,128], index: 0, kind: input, shape index: {}]   ;;  %s1010_s1 = inlined_call_operand.hbm [shape: bf16[128,128], index: 1, kind: input, shape index: {}]   ;;  %s1011_s2 = inlined_call_operand.hbm [shape: f32[128,128], index: 2, kind: output, shape index: {}]  }
   0x1   :  { %8 = vsyncpa [#allocation7], 0 }
   0x2   :  { %9 = vsyncpa [#allocation5], 0  ;;  %s896_s9 = smov [#allocation3]   ;;  %s824_s13 = scalar_lea.hbm %s1009_s0, 1024 }
   0x3   :  { %s15_s10 = sshll.u32 %s896_s9, 4  ;;  %p825_p0 = scmp.ne.s32.totalorder %s1009_s0, %s824_s13  ;;  %s16_s10 = int_to_ptr.vmem [resolvable:$true] %s15_s10 }
   0x4   :  { %p828_p1 = scmp.lt.u32.totalorder %s824_s13, %s1009_s0 }
   0x6   :  { %p830_p2 = pnand %p828_p1, %p825_p0 }
   0x8   :  { %833 = shalt.err (!%p830_p2)
}
   0x9   :  { %s834_s18 = scalar_lea.vmem %s16_s10, 1024  ;;  %p839_p4 = scmp.lt.s32.totalorder %s16_s10, %s16_s10 }
   0xa   :  { %p835_p3 = scmp.ne.s32.totalorder %s16_s10, %s834_s18  ;;  %p840_p5 = scmp.lt.s32.totalorder %s834_s18, %s834_s18 }
   0xc   :  { %p841_p6 = por %p840_p5, %p839_p4 }
   0xe   :  { %p842_p7 = pnand %p841_p6, %p835_p3 }
  0x10   :  { %845 = shalt.err (!%p842_p7)
}
  0x11   :  { %s897_s19 = smov 64   ;;  %s898_s20 = smov 4  }
  0x12   :  { %21 = dma.hbm_to_vmem [thread:$0]  %s1009_s0, 1024, %s16_s10, [#allocation4], %s897_s19, %s897_s19, %s898_s20  }
  0x13   :  { %s899_s23 = smov [#allocation6]   ;;  %s846_s27 = scalar_lea.hbm %s1010_s1, 1024 }
  0x14   :  { %s27_s24 = sshll.u32 %s899_s23, 4  ;;  %p847_p8 = scmp.ne.s32.totalorder %s1010_s1, %s846_s27  ;;  %s28_s24 = int_to_ptr.vmem [resolvable:$true] %s27_s24 }
  0x15   :  { %p850_p9 = scmp.lt.u32.totalorder %s846_s27, %s1010_s1 }
  0x17   :  { %p852_p10 = pnand %p850_p9, %p847_p8 }
  0x19   :  { %855 = shalt.err (!%p852_p10)
}
  0x1a   :  { %s856_s4 = scalar_lea.vmem %s28_s24, 1024  ;;  %p861_p12 = scmp.lt.s32.totalorder %s28_s24, %s28_s24 }
  0x1b   :  { %p857_p11 = scmp.ne.s32.totalorder %s28_s24, %s856_s4  ;;  %p862_p13 = scmp.lt.s32.totalorder %s856_s4, %s856_s4 }
  0x1d   :  { %p863_p0 = por %p862_p13, %p861_p12 }
  0x1f   :  { %p864_p1 = pnand %p863_p0, %p857_p11 }
  0x21   :  { %867 = shalt.err (!%p864_p1)
}
  0x22   :  { %33 = dma.hbm_to_vmem [thread:$0]  %s1010_s1, 1024, %s28_s24, [#allocation7], %s897_s19, %s897_s19, %s898_s20  }
  0x23   :  { %890 = dma.done.wait [#allocation4], 1024  }
  0x24   :  { %891 = vsyncadd [#allocation4], 4294966272 }
  0x25   :  { %892 = dma.done.wait [#allocation7], 1024  }
  0x26   :  { %893 = vsyncadd [#allocation7], 4294966272  ;;  %vm61_vm0 = vcmask 7168   ;;  %v900_v0 = vmov 0.0   ;;  %v960_v1 = vld [vmem:[#allocation3 + $0x8] sm:$0xff]   ;;  %v78_v2 = vld [vmem:[#allocation3] sm:$0xff]  }
  0x27   :  { %64 = vst.msk [vmem:[#allocation2 + $0x10] sm:$0xff] %vm61_vm0, %v900_v0  ;;  %62 = vst.msk [vmem:[#allocation2] sm:$0xff] %vm61_vm0, %v900_v0  ;;  %v369_v3 = vunpack.c.l.bf16 %v960_v1  ;;  %v367_v4 = vunpack.c.l.bf16 %v78_v2  ;;  %v963_v5 = vld [vmem:[#allocation3 + $0x10] sm:$0xff]   ;;  %v370_v6 = vunpack.c.h.bf16 %v960_v1  ;;  %v368_v7 = vunpack.c.h.bf16 %v78_v2  ;;  %v772_v8 = vld [vmem:[#allocation6] sm:$0xff]   ;;  %725 = vmatprep.mubr.bf16.mxu0 %v78_v2  ;;  %s902_s1 = smov [#allocation8]  }
  0x28   :  { %63 = vst.msk [vmem:[#allocation2 + $0x8] sm:$0xff] %vm61_vm0, %v900_v0  ;;  %65 = vst.msk [vmem:[#allocation2 + $0x18] sm:$0xff] %vm61_vm0, %v900_v0  ;;  %v774_v9 = vld [vmem:[#allocation6 + $0x8] sm:$0xff]   ;;  %v87_v10 = vld [vmem:[#allocation3 + $0x20] sm:$0xff]   ;;  %709 = vmatprep.subr.bf16.mxu0 %v772_v8  ;;  %741 = vmatprep.subr.bf16.mxu1 %v772_v8  ;;  %v372_v11 = vunpack.c.h.bf16 %v963_v5  ;;  %v371_v13 = vunpack.c.l.bf16 %v963_v5  ;;  %v901_v33 = vmov 0   ;;  %s664_s6 = sshll.u32 %s902_s1, 4  ;;  %s665_s6 = int_to_ptr.vmem [resolvable:$true] %s664_s6 }
  0x29   :  { %66 = vst.msk [vmem:[#allocation2 + $0x20] sm:$0xff] %vm61_vm0, %v900_v0  ;;  %67 = vst.msk [vmem:[#allocation2 + $0x28] sm:$0xff] %vm61_vm0, %v900_v0  ;;  %387 = vadd.xlane.f32.xlu1 %v369_v3  ;;  %383 = vadd.xlane.f32.xlu0 %v367_v4  ;;  %v967_v12 = vld [vmem:[#allocation3 + $0x18] sm:$0xff]   ;;  %v776_v14 = vld [vmem:[#allocation6 + $0x10] sm:$0xff]   ;;  %v376_v18 = vunpack.c.h.bf16 %v87_v10  ;;  %v375_v19 = vunpack.c.l.bf16 %v87_v10  ;;  %s868_s7 = scalar_lea.vmem %s665_s6, 2048  ;;  %p873_p3 = scmp.lt.s32.totalorder %s665_s6, %s665_s6 }
  0x2a   :  { %68 = vst.msk [vmem:[#allocation2 + $0x30] sm:$0xff] %vm61_vm0, %v900_v0  ;;  %69 = vst.msk [vmem:[#allocation2 + $0x38] sm:$0xff] %vm61_vm0, %v900_v0  ;;  %710 = vmatpush3.bf16.msra.mxu0 %v772_v8  ;;  %749 = vmatpush3.bf16.msra.mxu1 %v772_v8  ;;  %v374_v15 = vunpack.c.h.bf16 %v967_v12  ;;  %v373_v16 = vunpack.c.l.bf16 %v967_v12  ;;  %v777_v17 = vld [vmem:[#allocation6 + $0x18] sm:$0xff]   ;;  %v89_v20 = vld [vmem:[#allocation3 + $0x28] sm:$0xff]   ;;  %p869_p2 = scmp.ne.s32.totalorder %s665_s6, %s868_s7  ;;  %p874_p4 = scmp.lt.s32.totalorder %s868_s7, %s868_s7 }
  0x2b   :  { %70 = vst.msk [vmem:[#allocation2 + $0x40] sm:$0xff] %vm61_vm0, %v900_v0  ;;  %71 = vst.msk [vmem:[#allocation2 + $0x48] sm:$0xff] %vm61_vm0, %v900_v0  ;;  %711 = vmatprep.subr.bf16.mxu0 %v774_v9  ;;  %742 = vmatprep.subr.bf16.mxu1 %v774_v9  ;;  %v778_v21 = vld [vmem:[#allocation6 + $0x20] sm:$0xff]   ;;  %v378_v22 = vunpack.c.h.bf16 %v89_v20  ;;  %v377_v23 = vunpack.c.l.bf16 %v89_v20  ;;  %v91_v24 = vld [vmem:[#allocation3 + $0x30] sm:$0xff]  }
  0x2c   :  { %72 = vst.msk [vmem:[#allocation2 + $0x50] sm:$0xff] %vm61_vm0, %v900_v0  ;;  %73 = vst.msk [vmem:[#allocation2 + $0x58] sm:$0xff] %vm61_vm0, %v900_v0  ;;  %733 = vmatprep.mubr.bf16.mxu1 %v87_v10  ;;  %v779_v25 = vld [vmem:[#allocation6 + $0x28] sm:$0xff]   ;;  %v380_v26 = vunpack.c.h.bf16 %v91_v24  ;;  %v379_v27 = vunpack.c.l.bf16 %v91_v24  ;;  %v93_v28 = vld [vmem:[#allocation3 + $0x38] sm:$0xff]   ;;  %766 = vset.pattern.permute.xlu0 %v901_v33  ;;  %p875_p5 = por %p874_p4, %p873_p3 }
  0x2d   :  { %74 = vst.msk [vmem:[#allocation2 + $0x60] sm:$0xff] %vm61_vm0, %v900_v0  ;;  %75 = vst.msk [vmem:[#allocation2 + $0x68] sm:$0xff] %vm61_vm0, %v900_v0  ;;  %389 = vadd.xlane.f32.xlu1 %v370_v6  ;;  %385 = vadd.xlane.f32.xlu0 %v368_v7  ;;  %v780_v29 = vld [vmem:[#allocation6 + $0x30] sm:$0xff]   ;;  %v382_v30 = vunpack.c.h.bf16 %v93_v28  ;;  %v381_v31 = vunpack.c.l.bf16 %v93_v28  ;;  %v781_v32 = vld [vmem:[#allocation6 + $0x38] sm:$0xff]  }
  0x2e   :  { %76 = vst.msk [vmem:[#allocation2 + $0x70] sm:$0xff] %vm61_vm0, %v900_v0  ;;  %77 = vst.msk [vmem:[#allocation2 + $0x78] sm:$0xff] %vm61_vm0, %v900_v0  ;;  %712 = vmatpush3.bf16.msra.mxu0 %v774_v9  ;;  %750 = vmatpush3.bf16.msra.mxu1 %v774_v9  ;;  %v353_v34 = vld [vmem:[#allocation2 + $0x10] sm:$0xff]  ;;  %v351_v35 = vld [vmem:[#allocation2] sm:$0xff]  ;;  %p876_p6 = pnand %p875_p5, %p869_p2 }
  0x2f   :  { %713 = vmatprep.subr.bf16.mxu0 %v776_v14  ;;  %743 = vmatprep.subr.bf16.mxu1 %v776_v14  ;;  %v354_v40 = vld [vmem:[#allocation2 + $0x18] sm:$0xff]  ;;  %v352_v41 = vld [vmem:[#allocation2 + $0x8] sm:$0xff] }
  0x30   :  { %767 = vset.pattern.permute.xlu1 %v901_v33  ;;  %v356_v46 = vld [vmem:[#allocation2 + $0x28] sm:$0xff]  ;;  %v355_v47 = vld [vmem:[#allocation2 + $0x20] sm:$0xff] }
  0x31   :  { %393 = vadd.xlane.f32.xlu1 %v372_v11  ;;  %391 = vadd.xlane.f32.xlu0 %v371_v13  ;;  %v358_v52 = vld [vmem:[#allocation2 + $0x38] sm:$0xff]  ;;  %v357_v53 = vld [vmem:[#allocation2 + $0x30] sm:$0xff] }
  0x32   :  { %714 = vmatpush3.bf16.msra.mxu0 %v776_v14  ;;  %751 = vmatpush3.bf16.msra.mxu1 %v776_v14  ;;  %v360_v61 = vld [vmem:[#allocation2 + $0x48] sm:$0xff]  ;;  %v359_v63 = vld [vmem:[#allocation2 + $0x40] sm:$0xff] }
  0x33   :  { %715 = vmatprep.subr.bf16.mxu0 %v777_v17  ;;  %744 = vmatprep.subr.bf16.mxu1 %v777_v17  ;;  %v362_v7 = vld [vmem:[#allocation2 + $0x58] sm:$0xff]  ;;  %v361_v8 = vld [vmem:[#allocation2 + $0x50] sm:$0xff] }
  0x35   :  { %397 = vadd.xlane.f32.xlu1 %v374_v15  ;;  %395 = vadd.xlane.f32.xlu0 %v373_v16  ;;  %v364_v15 = vld [vmem:[#allocation2 + $0x68] sm:$0xff]  ;;  %v363_v16 = vld [vmem:[#allocation2 + $0x60] sm:$0xff] }
  0x36   :  { %716 = vmatpush3.bf16.msra.mxu0 %v777_v17  ;;  %752 = vmatpush3.bf16.msra.mxu1 %v777_v17 }
  0x37   :  { %717 = vmatprep.subr.bf16.mxu0 %v778_v21  ;;  %745 = vmatprep.subr.bf16.mxu1 %v778_v21 }
  0x39   :  { %401 = vadd.xlane.f32.xlu1 %v376_v18  ;;  %399 = vadd.xlane.f32.xlu0 %v375_v19 }
  0x3a   :  { %718 = vmatpush3.bf16.msra.mxu0 %v778_v21  ;;  %753 = vmatpush3.bf16.msra.mxu1 %v778_v21 }
  0x3b   :  { %719 = vmatprep.subr.bf16.mxu0 %v779_v25  ;;  %746 = vmatprep.subr.bf16.mxu1 %v779_v25 }
  0x3d   :  { %405 = vadd.xlane.f32.xlu1 %v378_v22  ;;  %403 = vadd.xlane.f32.xlu0 %v377_v23 }
  0x3e   :  { %720 = vmatpush3.bf16.msra.mxu0 %v779_v25  ;;  %754 = vmatpush3.bf16.msra.mxu1 %v779_v25 }
  0x3f   :  { %721 = vmatprep.subr.bf16.mxu0 %v780_v29  ;;  %747 = vmatprep.subr.bf16.mxu1 %v780_v29 }
  0x41   :  { %409 = vadd.xlane.f32.xlu1 %v380_v26  ;;  %407 = vadd.xlane.f32.xlu0 %v379_v27  ;;  %v365_v26 = vld [vmem:[#allocation2 + $0x70] sm:$0xff] }
  0x42   :  { %722 = vmatpush3.bf16.msra.mxu0 %v780_v29  ;;  %755 = vmatpush3.bf16.msra.mxu1 %v780_v29 }
  0x43   :  { %723 = vmatprep.subr.bf16.mxu0 %v781_v32  ;;  %748 = vmatprep.subr.bf16.mxu1 %v781_v32 }
  0x45   :  { %413 = vadd.xlane.f32.xlu1 %v382_v30  ;;  %411 = vadd.xlane.f32.xlu0 %v381_v31 }
  0x46   :  { %724 = vmatpush3.bf16.msra.mxu0 %v781_v32  ;;  %756 = vmatpush3.bf16.msra.mxu1 %v781_v32 }
  0x49   :  { %726 = vmatmul.mubr.bf16.vlgmr.msra.gmra.mrb[0].mxu0 %v960_v1  ;;  %734 = vmatmul.mubr.bf16.vlgmr.msra.gmra.mrb[0].mxu1 %v89_v20 }
  0x4a   :  { %729 = vmatprep.mubr.bf16.mxu0 %v963_v5  ;;  %737 = vmatprep.mubr.bf16.mxu1 %v91_v24  ;;  %v366_v24 = vld [vmem:[#allocation2 + $0x78] sm:$0xff] }
  0x51   :  { %730 = vmatmul.mubr.bf16.gmra.mrb[4].mxu0 %v967_v12  ;;  %738 = vmatmul.mubr.bf16.gmra.mrb[4].mxu1 %v93_v28 }
  0xb6   :  { %v388_v36 = vpop.xlane.xlu1 %387  ;;  %v384_v37 = vpop.xlane.xlu0 %383 }
  0xb7   :  { %v417_v38 = vadd.f32 %v388_v36, %v353_v34  ;;  %v415_v39 = vadd.f32 %v384_v37, %v351_v35 }
  0xb9   :  { %434 = vst.msk [vmem:[#allocation2 + $0x10] sm:$0xff] %vm61_vm0, %v417_v38  ;;  %432 = vst.msk [vmem:[#allocation2] sm:$0xff] %vm61_vm0, %v415_v39 }
  0xba   :  { %v390_v42 = vpop.xlane.xlu1 %389  ;;  %v386_v43 = vpop.xlane.xlu0 %385 }
  0xbb   :  { %v418_v44 = vadd.f32 %v390_v42, %v354_v40  ;;  %v416_v45 = vadd.f32 %v386_v43, %v352_v41 }
  0xbd   :  { %435 = vst.msk [vmem:[#allocation2 + $0x18] sm:$0xff] %vm61_vm0, %v418_v44  ;;  %433 = vst.msk [vmem:[#allocation2 + $0x8] sm:$0xff] %vm61_vm0, %v416_v45 }
  0xbe   :  { %v394_v48 = vpop.xlane.xlu1 %393  ;;  %v392_v49 = vpop.xlane.xlu0 %391 }
  0xbf   :  { %v420_v50 = vadd.f32 %v394_v48, %v356_v46  ;;  %v419_v51 = vadd.f32 %v392_v49, %v355_v47 }
  0xc0   :  { %v451_v54 = vld [vmem:[#allocation2] sm:$0xff]  ;;  %v453_v58 = vld [vmem:[#allocation2 + $0x10] sm:$0xff] }
  0xc1   :  { %437 = vst.msk [vmem:[#allocation2 + $0x28] sm:$0xff] %vm61_vm0, %v420_v50  ;;  %436 = vst.msk [vmem:[#allocation2 + $0x20] sm:$0xff] %vm61_vm0, %v419_v51  ;;  %v467_v55 = vadd.f32 1e-06, %v451_v54  ;;  %v469_v1 = vadd.f32 1e-06, %v453_v58 }
  0xc2   :  { %v398_v56 = vpop.xlane.xlu1 %397  ;;  %v396_v57 = vpop.xlane.xlu0 %395 }
  0xc3   :  { %v422_v59 = vadd.f32 %v398_v56, %v358_v52  ;;  %v421_v60 = vadd.f32 %v396_v57, %v357_v53  ;;  %792 = vrcp.f32 %v467_v55 }
  0xc4   :  { %v452_v62 = vld [vmem:[#allocation2 + $0x8] sm:$0xff]  ;;  %v454_v4 = vld [vmem:[#allocation2 + $0x18] sm:$0xff] }
  0xc5   :  { %439 = vst.msk [vmem:[#allocation2 + $0x38] sm:$0xff] %vm61_vm0, %v422_v59  ;;  %438 = vst.msk [vmem:[#allocation2 + $0x30] sm:$0xff] %vm61_vm0, %v421_v60  ;;  %v468_v0 = vadd.f32 1e-06, %v452_v62  ;;  %v470_v9 = vadd.f32 1e-06, %v454_v4 }
  0xc6   :  { %v402_v2 = vpop.xlane.xlu1 %401  ;;  %v400_v3 = vpop.xlane.xlu0 %399 }
  0xc7   :  { %v424_v5 = vadd.f32 %v402_v2, %v360_v61  ;;  %794 = vrcp.f32 %v468_v0  ;;  %v423_v6 = vadd.f32 %v400_v3, %v359_v63 }
  0xc8   :  { %796 = vrcp.f32 %v469_v1  ;;  %v455_v12 = vld [vmem:[#allocation2 + $0x20] sm:$0xff]  ;;  %v456_v21 = vld [vmem:[#allocation2 + $0x28] sm:$0xff] }
  0xc9   :  { %441 = vst.msk [vmem:[#allocation2 + $0x48] sm:$0xff] %vm61_vm0, %v424_v5  ;;  %440 = vst.msk [vmem:[#allocation2 + $0x40] sm:$0xff] %vm61_vm0, %v423_v6  ;;  %798 = vrcp.f32 %v470_v9  ;;  %v471_v18 = vadd.f32 1e-06, %v455_v12  ;;  %v472_v29 = vadd.f32 1e-06, %v456_v21 }
  0xca   :  { %v406_v10 = vpop.xlane.xlu1 %405  ;;  %v404_v11 = vpop.xlane.xlu0 %403 }
  0xcb   :  { %v426_v13 = vadd.f32 %v406_v10, %v362_v7  ;;  %v425_v14 = vadd.f32 %v404_v11, %v361_v8  ;;  %800 = vrcp.f32 %v471_v18 }
  0xcc   :  { %v457_v32 = vld [vmem:[#allocation2 + $0x30] sm:$0xff]  ;;  %v458_v39 = vld [vmem:[#allocation2 + $0x38] sm:$0xff] }
  0xcd   :  { %v793_v17 = vpop.eup %792  ;;  %443 = vst.msk [vmem:[#allocation2 + $0x58] sm:$0xff] %vm61_vm0, %v426_v13  ;;  %442 = vst.msk [vmem:[#allocation2 + $0x50] sm:$0xff] %vm61_vm0, %v425_v14  ;;  %v473_v38 = vadd.f32 1e-06, %v457_v32  ;;  %v474_v43 = vadd.f32 1e-06, %v458_v39 }
  0xce   :  { %v410_v19 = vpop.xlane.xlu1 %409  ;;  %533 = vperm.xlu0 %766, %v793_v17   ;;  %v408_v20 = vpop.xlane.xlu0 %407 }
  0xcf   :  { %v428_v22 = vadd.f32 %v410_v19, %v364_v15  ;;  %v427_v23 = vadd.f32 %v408_v20, %v363_v16 }
  0xd0   :  { %v460_v25 = vld [vmem:[#allocation2 + $0x48] sm:$0xff]  ;;  %v459_v44 = vld [vmem:[#allocation2 + $0x40] sm:$0xff] }
  0xd1   :  { %v795_v27 = vpop.eup %794  ;;  %445 = vst.msk [vmem:[#allocation2 + $0x68] sm:$0xff] %vm61_vm0, %v428_v22  ;;  %444 = vst.msk [vmem:[#allocation2 + $0x60] sm:$0xff] %vm61_vm0, %v427_v23  ;;  %v476_v28 = vadd.f32 1e-06, %v460_v25  ;;  %v475_v49 = vadd.f32 1e-06, %v459_v44 }
  0xd2   :  { %v414_v30 = vpop.xlane.xlu1 %413  ;;  %538 = vperm.xlu1 %767, %v795_v27   ;;  %v412_v31 = vpop.xlane.xlu0 %411 }
  0xd3   :  { %v797_v33 = vpop.eup %796  ;;  %v430_v34 = vadd.f32 %v414_v30, %v366_v24  ;;  %802 = vrcp.f32 %v476_v28  ;;  %v429_v35 = vadd.f32 %v412_v31, %v365_v26 }
  0xd4   :  { %v462_v36 = vld [vmem:[#allocation2 + $0x58] sm:$0xff]  ;;  %804 = vrcp.f32 %v472_v29  ;;  %v799_v40 = vpop.eup %798  ;;  %v461_v50 = vld [vmem:[#allocation2 + $0x50] sm:$0xff] }
  0xd5   :  { %447 = vst.msk [vmem:[#allocation2 + $0x78] sm:$0xff] %vm61_vm0, %v430_v34  ;;  %446 = vst.msk [vmem:[#allocation2 + $0x70] sm:$0xff] %vm61_vm0, %v429_v35  ;;  %v478_v37 = vadd.f32 1e-06, %v462_v36  ;;  %v801_v45 = vpop.eup %800  ;;  %v477_v53 = vadd.f32 1e-06, %v461_v50 }
  0xd6   :  { %543 = vperm.xlu1 %767, %v797_v33  }
  0xd7   :  { %806 = vrcp.f32 %v478_v37 }
  0xd8   :  { %v464_v41 = vld [vmem:[#allocation2 + $0x68] sm:$0xff]  ;;  %808 = vrcp.f32 %v473_v38  ;;  %v463_v54 = vld [vmem:[#allocation2 + $0x60] sm:$0xff] }
  0xd9   :  { %v480_v42 = vadd.f32 1e-06, %v464_v41  ;;  %v479_v57 = vadd.f32 1e-06, %v463_v54 }
  0xda   :  { %548 = vperm.xlu1 %767, %v799_v40  }
  0xdb   :  { %810 = vrcp.f32 %v480_v42 }
  0xdc   :  { %v466_v46 = vld [vmem:[#allocation2 + $0x78] sm:$0xff]  ;;  %812 = vrcp.f32 %v474_v43  ;;  %v465_v58 = vld [vmem:[#allocation2 + $0x70] sm:$0xff] }
  0xdd   :  { %v803_v47 = vpop.eup %802  ;;  %v482_v48 = vadd.f32 1e-06, %v466_v46  ;;  %v481_v61 = vadd.f32 1e-06, %v465_v58 }
  0xde   :  { %553 = vperm.xlu1 %767, %v801_v45   ;;  %578 = vperm.xlu0 %766, %v803_v47   ;;  %v805_v51 = vpop.eup %804 }
  0xdf   :  { %814 = vrcp.f32 %v482_v48 }
  0xe0   :  { %816 = vrcp.f32 %v475_v49 }
  0xe1   :  { %v807_v52 = vpop.eup %806  ;;  %818 = vrcp.f32 %v477_v53 }
  0xe2   :  { %558 = vperm.xlu1 %767, %v805_v51   ;;  %588 = vperm.xlu0 %766, %v807_v52   ;;  %v809_v55 = vpop.eup %808  ;;  %820 = vrcp.f32 %v479_v57 }
  0xe3   :  { %822 = vrcp.f32 %v481_v61 }
  0xe5   :  { %v811_v56 = vpop.eup %810 }
  0xe6   :  { %563 = vperm.xlu1 %767, %v809_v55   ;;  %598 = vperm.xlu0 %766, %v811_v56   ;;  %v813_v59 = vpop.eup %812 }
  0xe9   :  { %v815_v60 = vpop.eup %814 }
  0xea   :  { %568 = vperm.xlu1 %767, %v813_v59   ;;  %608 = vperm.xlu0 %766, %v815_v60   ;;  %v817_v62 = vpop.eup %816 }
  0xeb   :  { %v819_v63 = vpop.eup %818 }
  0xec   :  { %v821_v0 = vpop.eup %820 }
  0xed   :  { %v823_v1 = vpop.eup %822 }
  0xee   :  { %573 = vperm.xlu1 %767, %v817_v62  }
  0xf2   :  { %583 = vperm.xlu1 %767, %v819_v63  }
  0xf6   :  { %593 = vperm.xlu1 %767, %v821_v0  }
  0xfa   :  { %603 = vperm.xlu1 %767, %v823_v1  }
 0x11c   :  { %v727_v2 = vpop.f32.mrb[0].mxu0  ;;  %v991_v3 = vpop.f32.mrb[0].mxu1 }
 0x11d   :  { %v256_v4 = vpop.f32.mrb[1].mxu0  ;;  %v288_v5 = vpop.f32.mrb[1].mxu1 }
 0x11e   :  { %v728_v6 = vpop.f32.mrb[2].mxu0  ;;  %v736_v7 = vpop.f32.mrb[2].mxu1 }
 0x11f   :  { %v259_v8 = vpop.f32.mrb[3].mxu0  ;;  %v291_v9 = vpop.f32.mrb[3].mxu1 }
 0x124   :  { %v731_v10 = vpop.f32.mrb[4].mxu0  ;;  %v993_v11 = vpop.f32.mrb[4].mxu1 }
 0x125   :  { %v272_v12 = vpop.f32.mrb[5].mxu0  ;;  %v304_v13 = vpop.f32.mrb[5].mxu1 }
 0x126   :  { %v732_v14 = vpop.f32.mrb[6].mxu0  ;;  %v740_v15 = vpop.f32.mrb[6].mxu1 }
 0x127   :  { %v275_v16 = vpop.f32.mrb[7].mxu0  ;;  %v307_v17 = vpop.f32.mrb[7].mxu1 }
 0x14d   :  { %v534_v18 = vpop.permute.xlu0 %533 }
 0x14e   :  { %v611_v19 = vmul.f32 %v534_v18, %v256_v4 }
 0x150   :  { %v627_v20 = vmax.f32 %v611_v19, 0.0 }
 0x151   :  { %v539_v21 = vpop.permute.xlu1 %538 }
 0x152   :  { %643 = vst [vmem:[#allocation8] sm:$0xff] %v627_v20  ;;  %v612_v22 = vmul.f32 %v539_v21, %v259_v8 }
 0x154   :  { %v628_v23 = vmax.f32 %v612_v22, 0.0 }
 0x155   :  { %v544_v24 = vpop.permute.xlu1 %543 }
 0x156   :  { %644 = vst [vmem:[#allocation8 + $0x8] sm:$0xff] %v628_v23  ;;  %v613_v25 = vmul.f32 %v727_v2, %v544_v24 }
 0x158   :  { %v629_v26 = vmax.f32 %v613_v25, 0.0 }
 0x159   :  { %v549_v27 = vpop.permute.xlu1 %548 }
 0x15a   :  { %645 = vst [vmem:[#allocation8 + $0x10] sm:$0xff] %v629_v26  ;;  %v614_v28 = vmul.f32 %v728_v6, %v549_v27 }
 0x15c   :  { %v630_v29 = vmax.f32 %v614_v28, 0.0 }
 0x15d   :  { %v554_v30 = vpop.permute.xlu1 %553  ;;  %v579_v31 = vpop.permute.xlu0 %578 }
 0x15e   :  { %646 = vst [vmem:[#allocation8 + $0x18] sm:$0xff] %v630_v29  ;;  %v615_v32 = vmul.f32 %v554_v30, %v272_v12  ;;  %v620_v33 = vmul.f32 %v579_v31, %v291_v9 }
 0x160   :  { %v631_v34 = vmax.f32 %v615_v32, 0.0  ;;  %v636_v35 = vmax.f32 %v620_v33, 0.0 }
 0x161   :  { %v559_v36 = vpop.permute.xlu1 %558  ;;  %v589_v37 = vpop.permute.xlu0 %588 }
 0x162   :  { %647 = vst [vmem:[#allocation8 + $0x20] sm:$0xff] %v631_v34  ;;  %652 = vst [vmem:[#allocation8 + $0x48] sm:$0xff] %v636_v35  ;;  %v616_v38 = vmul.f32 %v559_v36, %v275_v16  ;;  %v622_v39 = vmul.f32 %v736_v7, %v589_v37 }
 0x164   :  { %v632_v40 = vmax.f32 %v616_v38, 0.0  ;;  %v638_v41 = vmax.f32 %v622_v39, 0.0 }
 0x165   :  { %v564_v42 = vpop.permute.xlu1 %563  ;;  %v599_v43 = vpop.permute.xlu0 %598 }
 0x166   :  { %648 = vst [vmem:[#allocation8 + $0x28] sm:$0xff] %v632_v40  ;;  %654 = vst [vmem:[#allocation8 + $0x58] sm:$0xff] %v638_v41  ;;  %v617_v44 = vmul.f32 %v731_v10, %v564_v42  ;;  %v624_v45 = vmul.f32 %v599_v43, %v307_v17 }
 0x168   :  { %v633_v46 = vmax.f32 %v617_v44, 0.0  ;;  %v640_v47 = vmax.f32 %v624_v45, 0.0 }
 0x169   :  { %v569_v48 = vpop.permute.xlu1 %568  ;;  %v609_v49 = vpop.permute.xlu0 %608 }
 0x16a   :  { %649 = vst [vmem:[#allocation8 + $0x30] sm:$0xff] %v633_v46  ;;  %656 = vst [vmem:[#allocation8 + $0x68] sm:$0xff] %v640_v47  ;;  %v618_v50 = vmul.f32 %v732_v14, %v569_v48  ;;  %v626_v51 = vmul.f32 %v740_v15, %v609_v49 }
 0x16c   :  { %v634_v52 = vmax.f32 %v618_v50, 0.0  ;;  %v642_v53 = vmax.f32 %v626_v51, 0.0 }
 0x16d   :  { %v574_v54 = vpop.permute.xlu1 %573 }
 0x16e   :  { %650 = vst [vmem:[#allocation8 + $0x38] sm:$0xff] %v634_v52  ;;  %658 = vst [vmem:[#allocation8 + $0x78] sm:$0xff] %v642_v53  ;;  %v619_v55 = vmul.f32 %v574_v54, %v288_v5 }
 0x170   :  { %v635_v56 = vmax.f32 %v619_v55, 0.0 }
 0x171   :  { %v584_v57 = vpop.permute.xlu1 %583 }
 0x172   :  { %651 = vst [vmem:[#allocation8 + $0x40] sm:$0xff] %v635_v56  ;;  %v621_v58 = vmul.f32 %v991_v3, %v584_v57 }
 0x174   :  { %v637_v59 = vmax.f32 %v621_v58, 0.0 }
 0x175   :  { %v594_v60 = vpop.permute.xlu1 %593 }
 0x176   :  { %653 = vst [vmem:[#allocation8 + $0x50] sm:$0xff] %v637_v59  ;;  %v623_v61 = vmul.f32 %v594_v60, %v304_v13 }
 0x178   :  { %v639_v62 = vmax.f32 %v623_v61, 0.0 }
 0x179   :  { %v604_v63 = vpop.permute.xlu1 %603 }
 0x17a   :  { %655 = vst [vmem:[#allocation8 + $0x60] sm:$0xff] %v639_v62  ;;  %v625_v0 = vmul.f32 %v993_v11, %v604_v63 }
 0x17c   :  { %v641_v1 = vmax.f32 %v625_v0, 0.0 }
 0x17e   :  { %657 = vst [vmem:[#allocation8 + $0x70] sm:$0xff] %v641_v1 }
 0x17f   :  { %879 = shalt.err (!%p876_p6)
}
 0x180   :  { %s880_s10 = scalar_lea.hbm %s1011_s2, 2048 }
 0x181   :  { %p881_p7 = scmp.ne.s32.totalorder %s1011_s2, %s880_s10  ;;  %p884_p8 = scmp.lt.u32.totalorder %s880_s10, %s1011_s2 }
 0x183   :  { %p886_p9 = pnand %p884_p8, %p881_p7 }
 0x185   :  { %889 = shalt.err (!%p886_p9)
}
 0x186   :  { %s903_s15 = smov 128   ;;  %s904_s16 = smov 8  }
 0x187   :  { %670 = dma.vmem_to_hbm [thread:$0]  %s665_s6, 2048, %s1011_s2, [#allocation5], %s903_s15, %s903_s15, %s904_s16  }
 0x188   :  { %894 = dma.done.wait [#allocation5], 2048  }
 0x189   :  { %895 = vsyncadd [#allocation5], 4294965248 }
 0x18a   :  { %674 = vsyncpa [#allocation4], 1 }
 0x18b   :  { %675 = vsyncpa [#allocation7], 1 }
 0x18c   :  { %676 = vsyncpa [#allocation5], 1 }

</bundles_post_ra>
